<compile_context>
chip_gen: v7x
topology: tpu7x:2x2x1
jax: 0.10.0
libtpu: 0.0.40
codegen_flags: <defaults>
</compile_context>

<pallas_src>
import jax
import jax.numpy as jnp
from jax.experimental import pallas as pl
from jax.experimental.pallas import tpu as pltpu


# ----------------------------------------------------------------------------- helpers
def _vmem_limit_bytes():
    # Per-generation scoped-VMEM budget: ~3/4 of physical, capped at 96 MiB
    # (v5e/v6e: 128 MiB -> 96 MiB; v7x: 64 MiB/TC -> 48 MiB).
    cap = 128 * 1024 * 1024
    try:
        cap = pltpu.get_tpu_info().vmem_capacity_bytes
    except Exception:
        pass
    return int(min(96 * 1024 * 1024, (cap * 3) // 4))


def _erf(z):
    # Exact-erf GELU needs erf, which has no guaranteed Mosaic lowering, so use the
    # Abramowitz & Stegun 7.1.26 polynomial (|abs err| < 1.5e-7, i.e. f32-exact here)
    # built only from ops with known lowerings (exp / mul / add / where).
    a1, a2, a3, a4, a5 = 0.254829592, -0.284496736, 1.421413741, -1.453152027, 1.061405429
    p = 0.3275911
    az = jnp.abs(z)
    t = 1.0 / (1.0 + p * az)
    poly = ((((a5 * t + a4) * t + a3) * t + a2) * t + a1) * t
    r = 1.0 - poly * jnp.exp(-az * az)
    return jnp.where(z < 0.0, -r, r)


def _gelu_exact(x):
    # nn.GELU() default (approximate='none'): 0.5 * x * (1 + erf(x / sqrt(2)))
    return 0.5 * x * (1.0 + _erf(x * 0.7071067811865476))


# ------------------------------------------------------- pass 1: prototype normalization
def _proto_norm_kernel(v_ref, nv_ref, nvb_ref):
    v = v_ref[...]                                                # (tk, D) f32
    sumsq = jnp.sum(v * v, axis=-1, keepdims=True)
    nv = v * jax.lax.rsqrt(jnp.maximum(sumsq, 1e-24))             # == v / max(||v||, 1e-12)
    nv_ref[...] = nv
    nvb_ref[...] = nv.astype(jnp.bfloat16)


def _normalize_prototypes(v, *, tk=512):
    K, D = v.shape
    tk = min(tk, K)
    assert K % tk == 0, "out_dim must divide the prototype tile"
    return pl.pallas_call(
        _proto_norm_kernel,
        out_shape=(jax.ShapeDtypeStruct((K, D), jnp.float32),
                   jax.ShapeDtypeStruct((K, D), jnp.bfloat16)),
        grid=(K // tk,),
        in_specs=[pl.BlockSpec((tk, D), lambda k: (k, 0))],
        out_specs=(pl.BlockSpec((tk, D), lambda k: (k, 0)),
                   pl.BlockSpec((tk, D), lambda k: (k, 0))),
        compiler_params=pltpu.CompilerParams(
            dimension_semantics=("parallel",),
            vmem_limit_bytes=_vmem_limit_bytes()),
    )(v)


def prepare_dino_head_params(w1, b1, w2, b2, w3, b3, v, *, proto_tile=512):
    """One-shot parameter preparation (hoisted out of the per-forward path)."""
    normed_v, normed_v_bf16 = _normalize_prototypes(v, tk=proto_tile)
    return dict(
        w1=w1.astype(jnp.bfloat16), b1=b1,          # bf16 MXU operands, cast once
        w2=w2.astype(jnp.bfloat16), b2=b2,
        w3=w3.astype(jnp.bfloat16), b3=b3,
        normed_v=normed_v,                          # (K, D) f32 -> returned as normed_prototypes
        vt_bf16=jnp.transpose(normed_v_bf16),       # (D, K) bf16: native MXU rhs layout
    )


# -------------------------------------------------------------- pass 2: fused forward
def _dino_fused_kernel(x_ref, w1_ref, b1_ref, w2_ref, b2_ref, w3_ref, b3_ref, vt_ref,
                       xn_ref, xproj_ref, logits_ref, xnb_ref):
    k = pl.program_id(1)

    # ---- batch-tile-only work: runs once per batch tile, results stay resident over k.
    @pl.when(k == 0)
    def _():
        x = x_ref[...]                                            # (tb, D) f32

        # 3-layer MLP: bf16 MXU operands, f32 accumulation, exact-erf GELU.
        h = jnp.dot(x.astype(jnp.bfloat16), w1_ref[...],
                    preferred_element_type=jnp.float32) + b1_ref[...]
        h = _gelu_exact(h)
        h = jnp.dot(h.astype(jnp.bfloat16), w2_ref[...],
                    preferred_element_type=jnp.float32) + b2_ref[...]
        h = _gelu_exact(h)
        xproj_ref[...] = jnp.dot(h.astype(jnp.bfloat16), w3_ref[...],
                                 preferred_element_type=jnp.float32) + b3_ref[...]

        # F.normalize(x, dim=-1, eps=1e-12) in f32 via rsqrt (EUP slot).
        sumsq = jnp.sum(x * x, axis=-1, keepdims=True)
        x_n = x * jax.lax.rsqrt(jnp.maximum(sumsq, 1e-24))        # == x / max(||x||, 1e-12)
        xn_ref[...] = x_n
        xnb_ref[...] = x_n.astype(jnp.bfloat16)                   # reused at every k step

    # ---- per-prototype-tile work: native (tb, D) x (D, tk) MXU matmul against the
    #      pre-normalized, pre-transposed bf16 prototypes (no transpose, no re-norm).
    logits_ref[...] = jnp.dot(xnb_ref[...], vt_ref[...],
                              preferred_element_type=jnp.float32)


def _fused_call(x, p, tb, tk, single_buffer_weights):
    B, D = x.shape
    H = p["w1"].shape[1]
    BD = p["w3"].shape[1]
    K = p["vt_bf16"].shape[1]

    grid = (B // tb, K // tk)

    resident = lambda i, k: (0, 0)                  # weights: same block every grid step
    # Constant index_map => double-buffering buys nothing; single-buffer to halve
    # the resident-weight VMEM footprint (critical inside v7x's 64 MiB/TC).
    res_kw = dict(pipeline_mode=pl.Buffered(1)) if single_buffer_weights else {}

    in_specs = [
        pl.BlockSpec((tb, D), lambda i, k: (i, 0)),               # x        (batch tile)
        pl.BlockSpec((D, H), resident, **res_kw),                 # w1 (bf16, resident)
        pl.BlockSpec((1, H), resident, **res_kw),                 # b1
        pl.BlockSpec((H, H), resident, **res_kw),                 # w2
        pl.BlockSpec((1, H), resident, **res_kw),                 # b2
        pl.BlockSpec((H, BD), resident, **res_kw),                # w3
        pl.BlockSpec((1, BD), resident, **res_kw),                # b3
        pl.BlockSpec((D, tk), lambda i, k: (0, k)),               # normed v^T (streamed over k)
    ]
    out_specs = (
        pl.BlockSpec((tb, D), lambda i, k: (i, 0)),               # x_n      (resident over k)
        pl.BlockSpec((tb, BD), lambda i, k: (i, 0)),              # x_proj   (resident over k)
        pl.BlockSpec((tb, tk), lambda i, k: (i, k)),              # logits   (lane-dense tile)
    )
    out_shapes = (
        jax.ShapeDtypeStruct((B, D), jnp.float32),
        jax.ShapeDtypeStruct((B, BD), jnp.float32),
        jax.ShapeDtypeStruct((B, K), jnp.float32),
    )

    n_batch_tiles = B // tb
    flops = 2 * B * (D * H + H * H + H * BD + D * K)
    bytes_accessed = (
        4 * (B * D + B * D + B * BD + B * K)        # x in; x_n / x_proj / logits out
        + 2 * (D * H + H * H + H * BD)              # bf16 MLP weights (read once)
        + 4 * (2 * H + BD)                          # biases
        + n_batch_tiles * D * K * 2)                # bf16 v^T re-streamed per batch tile
    cost = pl.CostEstimate(flops=flops, transcendentals=2 * B * H,
                           bytes_accessed=bytes_accessed)

    return pl.pallas_call(
        _dino_fused_kernel,
        out_shape=out_shapes,
        grid=grid,
        in_specs=in_specs,
        out_specs=out_specs,
        scratch_shapes=[pltpu.VMEM((tb, D), jnp.bfloat16)],       # bf16 x_n, reused over k
        compiler_params=pltpu.CompilerParams(
            dimension_semantics=("parallel", "arbitrary"),        # batch axis -> megacore
            vmem_limit_bytes=_vmem_limit_bytes()),
        cost_estimate=cost,
    )(x, p["w1"], p["b1"], p["w2"], p["b2"], p["w3"], p["b3"], p["vt_bf16"])


def dino_head_forward(x, params, *, tb=128, tk=512):
    """Fused DINOHead_k forward. Returns (x_n, x_proj, logits, normed_prototypes)."""
    B, _ = x.shape
    K = params["vt_bf16"].shape[1]
    tb = min(tb, B)
    tk = min(tk, K)
    assert B % tb == 0, "batch must divide the batch tile"
    assert K % tk == 0, "out_dim must divide the prototype tile"
    try:
        xn, xproj, logits = _fused_call(x, params, tb, tk, single_buffer_weights=True)
    except Exception:
        # Fallback for jax builds whose pallas_call lowering rejects
        # pipeline_mode=pl.Buffered(1) on the resident weight BlockSpecs.
        xn, xproj, logits = _fused_call(x, params, tb, tk, single_buffer_weights=False)
    return xn, xproj, logits, params["normed_v"]


# --------------------------------------------------------------------------- reference
def _reference(x, w1, b1, w2, b2, w3, b3, v):
    h = jax.nn.gelu(x @ w1 + b1, approximate=False)
    h = jax.nn.gelu(h @ w2 + b2, approximate=False)
    x_proj = h @ w3 + b3
    x_n = x / jnp.maximum(jnp.linalg.norm(x, axis=-1, keepdims=True), 1e-12)
    normed_v = v / jnp.maximum(jnp.linalg.norm(v, axis=-1, keepdims=True), 1e-12)
    logits = x_n @ normed_v.T
    return x_n, x_proj, logits, normed_v


if __name__ == "__main__":
    # Small-but-tileable shapes consistent with the module (in_dim -> hidden ->
    # hidden -> bottleneck MLP, plus an out_dim-way prototype layer on in_dim).
    B, IN_DIM, HIDDEN, BOTTLENECK, OUT_DIM = 256, 128, 256, 128, 1024

    key = jax.random.PRNGKey(0)
    ks = jax.random.split(key, 8)

    def trunc_normal(k, shape, std=0.02):
        return std * jax.random.truncated_normal(k, -2.0, 2.0, shape, jnp.float32)

    # MLP weights stored transposed: (in, out). Biases nonzero to exercise the add path.
    w1 = trunc_normal(ks[0], (IN_DIM, HIDDEN))
    b1 = 0.02 * jax.random.normal(ks[1], (1, HIDDEN), jnp.float32)
    w2 = trunc_normal(ks[2], (HIDDEN, HIDDEN))
    b2 = 0.02 * jax.random.normal(ks[3], (1, HIDDEN), jnp.float32)
    w3 = trunc_normal(ks[4], (HIDDEN, BOTTLENECK))
    b3 = 0.02 * jax.random.normal(ks[5], (1, BOTTLENECK), jnp.float32)
    v = jax.random.normal(ks[6], (OUT_DIM, IN_DIM), jnp.float32)    # prototype weight_v
    x = jax.random.normal(ks[7], (B, IN_DIM), jnp.float32)

    params = prepare_dino_head_params(w1, b1, w2, b2, w3, b3, v)    # one-shot prep pass
    outs = dino_head_forward(x, params, tb=128, tk=512)             # fused grid (2, 2)
    outs = jax.block_until_ready(outs)

    xn_r, xproj_r, logits_r, protos_r = _reference(x, w1, b1, w2, b2, w3, b3, v)
    x_n, x_proj, logits, protos = outs

    # f32-path outputs: tight tolerance.
    assert x_n.shape == xn_r.shape and x_n.dtype == xn_r.dtype
    assert jnp.allclose(x_n, xn_r, atol=1e-5, rtol=1e-5), "x_n mismatch"
    assert protos.shape == protos_r.shape and protos.dtype == protos_r.dtype
    assert jnp.allclose(protos, protos_r, atol=1e-5, rtol=1e-5), "normed_prototypes mismatch"
    # bf16-MXU outputs (f32 accumulation): relaxed tolerance.
    assert x_proj.shape == xproj_r.shape and x_proj.dtype == xproj_r.dtype
    assert jnp.allclose(x_proj, xproj_r, atol=1e-2, rtol=1e-2), "x_proj mismatch"
    assert logits.shape == logits_r.shape and logits.dtype == logits_r.dtype
    assert jnp.allclose(logits, logits_r, atol=1e-2, rtol=1e-2), "logits mismatch"

    print("KERNEL_OK")
</pallas_src>

<mosaic_0001>
module attributes {stable_mosaic.version = 11 : i64} {
  func.func @_proto_norm_kernel(%arg0: i32, %arg1: memref<512x128xf32, #tpu.memory_space<vmem>>, %arg2: memref<512x128xf32, #tpu.memory_space<vmem>>, %arg3: memref<512x128xbf16, #tpu.memory_space<vmem>>) attributes {dimension_semantics = [#tpu.dimension_semantics<parallel>], iteration_bounds = array<i64: 2>, scalar_prefetch = 0 : i64, scratch_operands = 0 : i64, tpu.core_type = #tpu.core_type<tc>, window_params = [{transform_indices = @transform_0, window_bounds = array<i64: 512, 128>}, {transform_indices = @transform_1, window_bounds = array<i64: 512, 128>}, {transform_indices = @transform_2, window_bounds = array<i64: 512, 128>}]} {
    %c0 = arith.constant 0 : index
    %c0_0 = arith.constant 0 : index
    %0 = vector.load %arg1[%c0, %c0_0] : memref<512x128xf32, #tpu.memory_space<vmem>>, vector<512x128xf32>
    %1 = arith.mulf %0, %0 : vector<512x128xf32>
    %cst = arith.constant dense<0.000000e+00> : vector<512xf32>
    %2 = vector.multi_reduction <add>, %1, %cst [1] : vector<512x128xf32> to vector<512xf32>
    %3 = vector.shape_cast %2 : vector<512xf32> to vector<512x1xf32>
    %cst_1 = arith.constant 1.000000e-24 : f32
    %4 = vector.broadcast %cst_1 : f32 to vector<512x1xf32>
    %5 = arith.maximumf %3, %4 : vector<512x1xf32>
    %6 = math.rsqrt %5 : vector<512x1xf32>
    %7 = vector.broadcast %6 : vector<512x1xf32> to vector<512x128xf32>
    %8 = arith.mulf %0, %7 : vector<512x128xf32>
    %c0_2 = arith.constant 0 : index
    %c0_3 = arith.constant 0 : index
    %9 = vector.load %arg2[%c0_2, %c0_3] : memref<512x128xf32, #tpu.memory_space<vmem>>, vector<512x128xf32>
    tpu.vector_store %arg2[%c0_2, %c0_3], %8 {strides = array<i32>} : memref<512x128xf32, #tpu.memory_space<vmem>>, vector<512x128xf32>,
    %10 = arith.truncf %8 : vector<512x128xf32> to vector<512x128xbf16>
    %c0_4 = arith.constant 0 : index
    %c0_5 = arith.constant 0 : index
    %11 = vector.load %arg3[%c0_4, %c0_5] : memref<512x128xbf16, #tpu.memory_space<vmem>>, vector<512x128xbf16>
    tpu.vector_store %arg3[%c0_4, %c0_5], %10 {strides = array<i32>} : memref<512x128xbf16, #tpu.memory_space<vmem>>, vector<512x128xbf16>,
    return
  }
  func.func @transform_0(%arg0: i32) -> (i32, i32) {
    %c0_i32 = arith.constant 0 : i32
    %c0_i32_0 = arith.constant 0 : i32
    return %arg0, %c0_i32 : i32, i32
  }
  func.func @transform_1(%arg0: i32) -> (i32, i32) {
    %c0_i32 = arith.constant 0 : i32
    %c0_i32_0 = arith.constant 0 : i32
    return %arg0, %c0_i32 : i32, i32
  }
  func.func @transform_2(%arg0: i32) -> (i32, i32) {
    %c0_i32 = arith.constant 0 : i32
    %c0_i32_0 = arith.constant 0 : i32
    return %arg0, %c0_i32 : i32, i32
  }
}

</mosaic_0001>

<bundles_post_ra>
// kernel: tpu_custom_call.1
= control target key start
LH: loop header
LB: loop body
LE: loop exit
PB: predicated region body
PF: predicated region fallthrough
CT: control target
= control target key end

     0   :  { %8 = vsyncpa [#allocation3], 0  ;;  %s2514_s0 = inlined_call_operand.hbm [shape: f32[1024,128], index: 0, kind: input, shape index: {}]   ;;  %s2515_s1 = inlined_call_operand.hbm [shape: f32[1024,128], index: 1, kind: output, shape index: {0}]   ;;  %s2516_s2 = inlined_call_operand.hbm [shape: bf16[1024,128], index: 2, kind: output, shape index: {1}]  }
   0x1   :  { %10 = vsyncpa [#allocation3 + $0x1], 0 }
   0x2   :  { %11 = vsyncpa [#allocation4], 0 }
   0x3   :  { %13 = vsyncpa [#allocation4 + $0x1], 0 }
   0x4   :  { %14 = vsyncpa [#allocation7], 0 }
   0x5   :  { %16 = vsyncpa [#allocation7 + $0x1], 0  ;;  %s1827_s9 = smov 0   ;;  %s1829_s10 = smov 0  }
   0x6   :  { %s1831_s11 = smov 0   ;;  %s1833_s12 = smov 0  }
   0x7 LB: > { %s1848_s13 = sadd.s32 4294967295, %s1801_s12   ;;  %s1148_s14 = sadd.s32 4294967294, %s1801_s12   ;;  %s1801_s12 = sphi %s1833_s12, %s2574_s12   ;;  %s1797_s11 = sphi %s1831_s11, %s2573_s11   ;;  %s1793_s10 = sphi %s1829_s10, %s2572_s10   ;;  %s1789_s9 = sphi %s1827_s9, %s2571_s9  }
   0x8   : > { %s1852_s15 = sadd.s32 1, %s1801_s12   ;;  %s29_s16 = sadd.s32 1, %s1797_s11 }
   0x9   : > { %s26_s17 = ssub.s32 %s1801_s12, %s1852_s15  ;;  %p36_p0 = scmp.ne.s32.totalorder %s1797_s11, %s1793_s10 }
   0xa   : > { %p27_p1 = scmp.eq.s32.totalorder %s26_s17, 0  ;;  %p37_p2 = scmp.eq.s32.totalorder %s1801_s12, 0 }
   0xb   : > { %p42_p3 = scmp.ne.s32.totalorder %s1793_s10, %s1789_s9  ;;  %p43_p4 = scmp.eq.s32.totalorder %s1848_s13, 0 }
   0xc   : > { %s1864_s18 = scalar_select %p27_p1, %s1797_s11, %s29_s16  }
   0xd   : > { %p1866_p5 = por %p37_p2, %p36_p0  ;;  %p1870_p6 = por %p43_p4, %p42_p3 }
   0xe   : > { %p66_p7 = scmp.eq.s32.totalorder %s1848_s13, 1  ;;  %p72_p8 = scmp.eq.s32.totalorder %s1148_s14, 1 }
   0xf   : > { %p1505_p10 = scmp.lt.s32.totalorder %s1801_s12, 2  ;;  %s118_s23 = sand.u32 1, %s1797_s11  }
  0x10   : > { %p1877_p11 = por %p66_p7, %p36_p0  ;;  %p1881_p12 = por %p72_p8, %p42_p3 }
  0x11   : > { %s1230_s24 = sshll.u32 %s1801_s12, 13  ;;  %s1151_s25 = sshll.u32 %s118_s23, 9 }
  0x12   : > { %s2535_s21 = scalar_select %p1877_p11, 1, 0 }
  0x13   : > { %s2536_s22 = scalar_select %p1881_p12, 1, 0 }
  0x14   : > { %s1890_s28 = scalar_lea.hbm %s2514_s0, %s1230_s24  ;;  %s122_s29 = scalar_lea.vmem [#allocation2], %s1151_s25 }
  0x15   : > { %s129_s30 = sshll.u32 %s122_s29, 4  ;;  %p1894_p13 = pnand %p1505_p10, %p1866_p5  ;;  %s1898_s30 = int_to_ptr.vmem [resolvable:$true] %s129_s30 }
  0x16   : > { %s1900_s4 = scalar_lea.sflag [#allocation3], %s118_s23  ;;  %s1673_s5 = scalar_lea.hbm %s1890_s28, 8192 }
  0x17   : > { %p1674_p0 = scmp.ne.s32.totalorder %s1890_s28, %s1673_s5  ;;  %p1675_p1 = pneg %p1894_p13 }
  0x18   : > { %s1678_s8 = scalar_lea.hbm %s2514_s0, 16384  ;;  %p1679_p4 = scmp.lt.u32.totalorder %s1890_s28, %s2514_s0 }
  0x19   : > { %p1676_p2 = pnand %p1675_p1, %p1674_p0  ;;  %p1680_p5 = scmp.lt.u32.totalorder %s1678_s8, %s1673_s5 }
  0x1a   : > { %p1682_p8 = scmp.lt.u32.totalorder %s1673_s5, %s1890_s28 }
  0x1b   : > { %p1677_p3 = pneg %p1676_p2  ;;  %p1681_p7 = por %p1680_p5, %p1679_p4 }
  0x1d   : > { %p1683_p10 = por %p1682_p8, %p1681_p7 }
  0x1f   : > { %p1684_p9 = pnand %p1683_p10, %p1677_p3 }
  0x21   : > { %1687 = shalt.err (!%p1684_p9)
}
  0x22   : > { %s1688_s17 = scalar_lea.vmem %s1898_s30, 8192  ;;  %s1803_s19 = smov [#allocation2]  }
  0x23   : > { %p1689_p0 = scmp.ne.s32.totalorder %s1898_s30, %s1688_s17  ;;  %s1693_s23 = sshll.u32 %s1803_s19, 4  ;;  %s1694_s23 = int_to_ptr.vmem [resolvable:$false] %s1693_s23 }
  0x24   : > { %s1695_s24 = scalar_lea.vmem %s1694_s23, 16384  ;;  %p1696_p11 = scmp.lt.s32.totalorder %s1898_s30, %s1694_s23 }
  0x25   : > { %p1691_p2 = pnand %p1689_p0, %p1675_p1  ;;  %p1697_p4 = scmp.lt.s32.totalorder %s1695_s24, %s1688_s17 }
  0x27   : > { %p1692_p12 = pneg %p1691_p2  ;;  %p1698_p5 = por %p1697_p4, %p1696_p11 }
  0x29   : > { %p1699_p7 = pnand %p1698_p5, %p1692_p12 }
  0x2b   : > { %1702 = shalt.err (!%p1699_p7)
}
  0x2c   : > { %s1804_s25 = smov 128   ;;  %s1805_s26 = smov 8  }
  0x2d   : > { %1497 = dma.hbm_to_vmem [thread:$0]  (!%p1894_p13), %s1890_s28, 8192, %s1898_s30, %s1900_s4, %s1804_s25, %s1804_s25, %s1805_s26  }
  0x2e   : > { %p1154_p9 = scmp.ge.s32.totalorder %s1801_s12, 1  ;;  %p137_p1 = scmp.lt.s32.totalorder %s1801_s12, 3 }
  0x30   : > { %p138_p3 = pnand %p1154_p9, %p137_p1 }
  0x32   : > { %141 = sbr.rel (%p138_p3) target bundleno = 385 (0x181), region = 24 }
  0x39   : > { %s1931_s27 = sand.u32 1, %s1793_s10  }
  0x3a   : > { %s1155_s29 = sshll.u32 %s1931_s27, 9  ;;  %s144_s5 = scalar_lea.sflag [#allocation3], %s1931_s27 }
  0x3b   : > { %s1937_s6 = scalar_lea.vmem [#allocation2], %s1155_s29 }
  0x3c   : > { %1776 = dma.done.wait (%p1870_p6), %s144_s5, 8192  }
  0x3d   : > { %1778 = vsyncadd (%p1870_p6), %s144_s5, 4294959104  ;;  %v1944_v0 = vld [vmem:[%s1937_s6 + $0x10] sm:$0xff]  ;;  %v1947_v1 = vld [vmem:[%s1937_s6] sm:$0xff]  ;;  %s2267_s20 = scalar_lea.vmem [#allocation5], %s1155_s29  ;;  %s1157_s28 = sshll.u32 %s1931_s27, 8 }
  0x3e   : > { %v1950_v2 = vld [vmem:[%s1937_s6 + $0x18] sm:$0xff]  ;;  %v242_v3 = vmul.f32 %v1944_v0, %v1944_v0  ;;  %v240_v4 = vmul.f32 %v1947_v1, %v1947_v1  ;;  %v1957_v5 = vld [vmem:[%s1937_s6 + $0x8] sm:$0xff]  ;;  %v1967_v9 = vld [vmem:[%s1937_s6 + $0x20] sm:$0xff]  ;;  %s2276_s30 = scalar_lea.vmem [#allocation6], %s1157_s28  ;;  %s1295_s3 = sshll.u32 %s1848_s13, 13 }
  0x3f   : > { %v243_v6 = vmul.f32 %v1950_v2, %v1950_v2  ;;  %v241_v7 = vmul.f32 %v1957_v5, %v1957_v5  ;;  %v1964_v8 = vld [vmem:[%s1937_s6 + $0x28] sm:$0xff]  ;;  %v244_v11 = vmul.f32 %v1967_v9, %v1967_v9  ;;  %v1974_v12 = vld [vmem:[%s1937_s6 + $0x38] sm:$0xff]  ;;  %v1977_v13 = vld [vmem:[%s1937_s6 + $0x30] sm:$0xff]  ;;  %s1027_s4 = sshll.u32 %s2267_s20, 4  ;;  %s2428_s14 = scalar_lea.hbm %s2515_s1, %s1295_s3  ;;  %s2434_s4 = int_to_ptr.vmem [resolvable:$true] %s1027_s4 }
  0x40   : > { %308 = vadd.xlane.f32.xlu1 %v242_v3  ;;  %304 = vadd.xlane.f32.xlu0 %v240_v4  ;;  %v245_v10 = vmul.f32 %v1964_v8, %v1964_v8  ;;  %v247_v14 = vmul.f32 %v1974_v12, %v1974_v12  ;;  %v246_v15 = vmul.f32 %v1977_v13, %v1977_v13  ;;  %v1984_v16 = vld [vmem:[%s1937_s6 + $0x48] sm:$0xff]  ;;  %v1987_v17 = vld [vmem:[%s1937_s6 + $0x40] sm:$0xff]  ;;  %v1994_v20 = vld [vmem:[%s1937_s6 + $0x58] sm:$0xff]  ;;  %s1296_s16 = sshll.u32 %s1848_s13, 12  ;;  %s1043_s17 = sshll.u32 %s2276_s30, 4  ;;  %s2444_s17 = int_to_ptr.vmem [resolvable:$true] %s1043_s17 }
  0x41   : > { %v249_v18 = vmul.f32 %v1984_v16, %v1984_v16  ;;  %v248_v19 = vmul.f32 %v1987_v17, %v1987_v17  ;;  %v1997_v21 = vld [vmem:[%s1937_s6 + $0x50] sm:$0xff]  ;;  %v251_v22 = vmul.f32 %v1994_v20, %v1994_v20  ;;  %v2004_v24 = vld [vmem:[%s1937_s6 + $0x68] sm:$0xff]  ;;  %v2007_v25 = vld [vmem:[%s1937_s6 + $0x60] sm:$0xff]  ;;  %s2442_s24 = scalar_lea.hbm %s2516_s2, %s1296_s16  ;;  %s1009_s13 = scalar_lea.sflag [#allocation4], %s1931_s27 }
  0x42   : > { %v250_v23 = vmul.f32 %v1997_v21, %v1997_v21  ;;  %v253_v26 = vmul.f32 %v2004_v24, %v2004_v24  ;;  %v252_v27 = vmul.f32 %v2007_v25, %v2007_v25  ;;  %v2014_v28 = vld [vmem:[%s1937_s6 + $0x78] sm:$0xff]  ;;  %v2017_v29 = vld [vmem:[%s1937_s6 + $0x70] sm:$0xff]  ;;  %v2024_v32 = vld [vmem:[%s1937_s6 + $0x88] sm:$0xff]  ;;  %s1703_s25 = scalar_lea.vmem %s2434_s4, 8192  ;;  %p2568_p11 = scmp.ne.s32.totalorder %s2535_s21, 0 }
  0x43   : > { %v255_v30 = vmul.f32 %v2014_v28, %v2014_v28  ;;  %v254_v31 = vmul.f32 %v2017_v29, %v2017_v29  ;;  %v2027_v33 = vld [vmem:[%s1937_s6 + $0x80] sm:$0xff]  ;;  %v257_v34 = vmul.f32 %v2024_v32, %v2024_v32  ;;  %v2034_v36 = vld [vmem:[%s1937_s6 + $0x98] sm:$0xff]  ;;  %v2037_v37 = vld [vmem:[%s1937_s6 + $0x90] sm:$0xff]  ;;  %p1704_p6 = scmp.ne.s32.totalorder %s2434_s4, %s1703_s25  ;;  %s1806_s26 = smov [#allocation5]  }
  0x44   : > { %310 = vadd.xlane.f32.xlu1 %v243_v6  ;;  %306 = vadd.xlane.f32.xlu0 %v241_v7  ;;  %v256_v35 = vmul.f32 %v2027_v33, %v2027_v33  ;;  %v259_v38 = vmul.f32 %v2034_v36, %v2034_v36  ;;  %v258_v39 = vmul.f32 %v2037_v37, %v2037_v37  ;;  %v2044_v40 = vld [vmem:[%s1937_s6 + $0xa8] sm:$0xff]  ;;  %v2047_v41 = vld [vmem:[%s1937_s6 + $0xa0] sm:$0xff]  ;;  %v2054_v44 = vld [vmem:[%s1937_s6 + $0xb8] sm:$0xff]  ;;  %s1707_s29 = sshll.u32 %s1806_s26, 4  ;;  %s1708_s29 = int_to_ptr.vmem [resolvable:$false] %s1707_s29 }
  0x45   : > { %v261_v42 = vmul.f32 %v2044_v40, %v2044_v40  ;;  %v260_v43 = vmul.f32 %v2047_v41, %v2047_v41  ;;  %v2057_v45 = vld [vmem:[%s1937_s6 + $0xb0] sm:$0xff]  ;;  %v263_v46 = vmul.f32 %v2054_v44, %v2054_v44  ;;  %v2064_v48 = vld [vmem:[%s1937_s6 + $0xc8] sm:$0xff]  ;;  %v2067_v49 = vld [vmem:[%s1937_s6 + $0xc0] sm:$0xff]  ;;  %p1705_p12 = pnand %p1704_p6, %p2568_p11  ;;  %s1709_s5 = scalar_lea.vmem %s1708_s29, 16384 }
  0x46   : > { %v262_v47 = vmul.f32 %v2057_v45, %v2057_v45  ;;  %v265_v50 = vmul.f32 %v2064_v48, %v2064_v48  ;;  %v264_v51 = vmul.f32 %v2067_v49, %v2067_v49  ;;  %v2074_v52 = vld [vmem:[%s1937_s6 + $0xd8] sm:$0xff]  ;;  %v2077_v53 = vld [vmem:[%s1937_s6 + $0xd0] sm:$0xff]  ;;  %v2084_v56 = vld [vmem:[%s1937_s6 + $0xe8] sm:$0xff]  ;;  %p1710_p8 = scmp.lt.s32.totalorder %s2434_s4, %s1708_s29  ;;  %p1711_p10 = scmp.lt.s32.totalorder %s1709_s5, %s1703_s25 }
  0x47   : > { %v267_v54 = vmul.f32 %v2074_v52, %v2074_v52  ;;  %v266_v55 = vmul.f32 %v2077_v53, %v2077_v53  ;;  %v2087_v57 = vld [vmem:[%s1937_s6 + $0xe0] sm:$0xff]  ;;  %v269_v58 = vmul.f32 %v2084_v56, %v2084_v56  ;;  %v2094_v60 = vld [vmem:[%s1937_s6 + $0xf8] sm:$0xff]  ;;  %v2097_v61 = vld [vmem:[%s1937_s6 + $0xf0] sm:$0xff]  ;;  %p1706_p13 = pneg %p1705_p12 }
  0x48   : > { %314 = vadd.xlane.f32.xlu1 %v245_v10  ;;  %312 = vadd.xlane.f32.xlu0 %v244_v11  ;;  %v268_v59 = vmul.f32 %v2087_v57, %v2087_v57  ;;  %v271_v62 = vmul.f32 %v2094_v60, %v2094_v60  ;;  %v270_v63 = vmul.f32 %v2097_v61, %v2097_v61  ;;  %v2104_v3 = vld [vmem:[%s1937_s6 + $0x108] sm:$0xff]  ;;  %v2107_v4 = vld [vmem:[%s1937_s6 + $0x100] sm:$0xff]  ;;  %v2114_v10 = vld [vmem:[%s1937_s6 + $0x118] sm:$0xff]  ;;  %p1712_p0 = por %p1711_p10, %p1710_p8 }
  0x49   : > { %v273_v6 = vmul.f32 %v2104_v3, %v2104_v3  ;;  %v272_v7 = vmul.f32 %v2107_v4, %v2107_v4  ;;  %v2117_v11 = vld [vmem:[%s1937_s6 + $0x110] sm:$0xff] }
  0x4a   : > { %p1713_p2 = pnand %p1712_p0, %p1706_p13 }
  0x4c   : > { %318 = vadd.xlane.f32.xlu1 %v247_v14  ;;  %316 = vadd.xlane.f32.xlu0 %v246_v15  ;;  %v275_v14 = vmul.f32 %v2114_v10, %v2114_v10  ;;  %v274_v15 = vmul.f32 %v2117_v11, %v2117_v11 }
  0x50   : > { %322 = vadd.xlane.f32.xlu1 %v249_v18  ;;  %320 = vadd.xlane.f32.xlu0 %v248_v19  ;;  %v2124_v18 = vld [vmem:[%s1937_s6 + $0x128] sm:$0xff]  ;;  %v2127_v19 = vld [vmem:[%s1937_s6 + $0x120] sm:$0xff] }
  0x54   : > { %326 = vadd.xlane.f32.xlu1 %v251_v22  ;;  %324 = vadd.xlane.f32.xlu0 %v250_v23  ;;  %v277_v22 = vmul.f32 %v2124_v18, %v2124_v18  ;;  %v276_v23 = vmul.f32 %v2127_v19, %v2127_v19 }
  0x58   : > { %330 = vadd.xlane.f32.xlu1 %v253_v26  ;;  %328 = vadd.xlane.f32.xlu0 %v252_v27  ;;  %v2134_v26 = vld [vmem:[%s1937_s6 + $0x138] sm:$0xff]  ;;  %v2137_v27 = vld [vmem:[%s1937_s6 + $0x130] sm:$0xff] }
  0x5c   : > { %334 = vadd.xlane.f32.xlu1 %v255_v30  ;;  %332 = vadd.xlane.f32.xlu0 %v254_v31  ;;  %v279_v30 = vmul.f32 %v2134_v26, %v2134_v26  ;;  %v278_v31 = vmul.f32 %v2137_v27, %v2137_v27 }
  0x60   : > { %338 = vadd.xlane.f32.xlu1 %v257_v34  ;;  %336 = vadd.xlane.f32.xlu0 %v256_v35  ;;  %v2144_v34 = vld [vmem:[%s1937_s6 + $0x148] sm:$0xff]  ;;  %v2147_v35 = vld [vmem:[%s1937_s6 + $0x140] sm:$0xff] }
  0x64   : > { %342 = vadd.xlane.f32.xlu1 %v259_v38  ;;  %340 = vadd.xlane.f32.xlu0 %v258_v39  ;;  %v281_v38 = vmul.f32 %v2144_v34, %v2144_v34  ;;  %v280_v39 = vmul.f32 %v2147_v35, %v2147_v35 }
  0x68   : > { %346 = vadd.xlane.f32.xlu1 %v261_v42  ;;  %344 = vadd.xlane.f32.xlu0 %v260_v43  ;;  %v2154_v42 = vld [vmem:[%s1937_s6 + $0x158] sm:$0xff]  ;;  %v2157_v43 = vld [vmem:[%s1937_s6 + $0x150] sm:$0xff] }
  0x6c   : > { %350 = vadd.xlane.f32.xlu1 %v263_v46  ;;  %348 = vadd.xlane.f32.xlu0 %v262_v47  ;;  %v283_v46 = vmul.f32 %v2154_v42, %v2154_v42  ;;  %v282_v47 = vmul.f32 %v2157_v43, %v2157_v43 }
  0x70   : > { %354 = vadd.xlane.f32.xlu1 %v265_v50  ;;  %352 = vadd.xlane.f32.xlu0 %v264_v51  ;;  %v2164_v50 = vld [vmem:[%s1937_s6 + $0x168] sm:$0xff]  ;;  %v2167_v51 = vld [vmem:[%s1937_s6 + $0x160] sm:$0xff] }
  0x74   : > { %358 = vadd.xlane.f32.xlu1 %v267_v54  ;;  %356 = vadd.xlane.f32.xlu0 %v266_v55  ;;  %v285_v54 = vmul.f32 %v2164_v50, %v2164_v50  ;;  %v284_v55 = vmul.f32 %v2167_v51, %v2167_v51 }
  0x78   : > { %362 = vadd.xlane.f32.xlu1 %v269_v58  ;;  %360 = vadd.xlane.f32.xlu0 %v268_v59  ;;  %v2174_v58 = vld [vmem:[%s1937_s6 + $0x178] sm:$0xff]  ;;  %v2177_v59 = vld [vmem:[%s1937_s6 + $0x170] sm:$0xff] }
  0x7c   : > { %366 = vadd.xlane.f32.xlu1 %v271_v62  ;;  %364 = vadd.xlane.f32.xlu0 %v270_v63  ;;  %v287_v62 = vmul.f32 %v2174_v58, %v2174_v58  ;;  %v286_v63 = vmul.f32 %v2177_v59, %v2177_v59 }
  0x80   : > { %370 = vadd.xlane.f32.xlu1 %v273_v6  ;;  %368 = vadd.xlane.f32.xlu0 %v272_v7  ;;  %v2184_v6 = vld [vmem:[%s1937_s6 + $0x188] sm:$0xff]  ;;  %v2187_v7 = vld [vmem:[%s1937_s6 + $0x180] sm:$0xff] }
  0x81   : > { %2538 = vst [vmem:[#allocation11_spill] sm:$0xff] %v2187_v7 }
  0x84   : > { %374 = vadd.xlane.f32.xlu1 %v275_v14  ;;  %372 = vadd.xlane.f32.xlu0 %v274_v15  ;;  %v289_v14 = vmul.f32 %v2184_v6, %v2184_v6  ;;  %v288_v15 = vmul.f32 %v2187_v7, %v2187_v7 }
  0x88   : > { %378 = vadd.xlane.f32.xlu1 %v277_v22  ;;  %376 = vadd.xlane.f32.xlu0 %v276_v23  ;;  %v2194_v22 = vld [vmem:[%s1937_s6 + $0x198] sm:$0xff]  ;;  %v2197_v23 = vld [vmem:[%s1937_s6 + $0x190] sm:$0xff] }
  0x89   : > { %2539 = vst [vmem:[#allocation12_spill] sm:$0xff] %v2194_v22  ;;  %2540 = vst [vmem:[#allocation13_spill] sm:$0xff] %v2197_v23 }
  0x8c   : > { %382 = vadd.xlane.f32.xlu1 %v279_v30  ;;  %380 = vadd.xlane.f32.xlu0 %v278_v31  ;;  %v291_v30 = vmul.f32 %v2194_v22, %v2194_v22  ;;  %v290_v31 = vmul.f32 %v2197_v23, %v2197_v23 }
  0x90   : > { %386 = vadd.xlane.f32.xlu1 %v281_v38  ;;  %384 = vadd.xlane.f32.xlu0 %v280_v39  ;;  %v2204_v38 = vld [vmem:[%s1937_s6 + $0x1a8] sm:$0xff]  ;;  %v2207_v39 = vld [vmem:[%s1937_s6 + $0x1a0] sm:$0xff] }
  0x91   : > { %2541 = vst [vmem:[#allocation14_spill] sm:$0xff] %v2204_v38  ;;  %2542 = vst [vmem:[#allocation15_spill] sm:$0xff] %v2207_v39 }
  0x94   : > { %390 = vadd.xlane.f32.xlu1 %v283_v46  ;;  %388 = vadd.xlane.f32.xlu0 %v282_v47  ;;  %v293_v46 = vmul.f32 %v2204_v38, %v2204_v38  ;;  %v292_v47 = vmul.f32 %v2207_v39, %v2207_v39 }
  0x98   : > { %394 = vadd.xlane.f32.xlu1 %v285_v54  ;;  %392 = vadd.xlane.f32.xlu0 %v284_v55  ;;  %v2214_v54 = vld [vmem:[%s1937_s6 + $0x1b8] sm:$0xff]  ;;  %v2217_v55 = vld [vmem:[%s1937_s6 + $0x1b0] sm:$0xff] }
  0x99   : > { %2543 = vst [vmem:[#allocation16_spill] sm:$0xff] %v2214_v54  ;;  %2544 = vst [vmem:[#allocation17_spill] sm:$0xff] %v2217_v55 }
  0x9c   : > { %398 = vadd.xlane.f32.xlu1 %v287_v62  ;;  %396 = vadd.xlane.f32.xlu0 %v286_v63  ;;  %v295_v62 = vmul.f32 %v2214_v54, %v2214_v54  ;;  %v294_v63 = vmul.f32 %v2217_v55, %v2217_v55  ;;  %v2247_v54 = vld [vmem:[%s1937_s6 + $0x1e0] sm:$0xff] }
  0x9d   : > { %2550 = vst [vmem:[#allocation23_spill] sm:$0xff] %v2247_v54 }
  0xa0   : > { %402 = vadd.xlane.f32.xlu1 %v289_v14  ;;  %400 = vadd.xlane.f32.xlu0 %v288_v15  ;;  %v2224_v14 = vld [vmem:[%s1937_s6 + $0x1c8] sm:$0xff]  ;;  %v2227_v15 = vld [vmem:[%s1937_s6 + $0x1c0] sm:$0xff] }
  0xa1   : > { %2545 = vst [vmem:[#allocation18_spill] sm:$0xff] %v2224_v14  ;;  %2546 = vst [vmem:[#allocation19_spill] sm:$0xff] %v2227_v15 }
  0xa4   : > { %406 = vadd.xlane.f32.xlu1 %v291_v30  ;;  %404 = vadd.xlane.f32.xlu0 %v290_v31  ;;  %v297_v30 = vmul.f32 %v2224_v14, %v2224_v14  ;;  %v296_v31 = vmul.f32 %v2227_v15, %v2227_v15  ;;  %v300_v14 = vmul.f32 %v2247_v54, %v2247_v54 }
  0xa8   : > { %410 = vadd.xlane.f32.xlu1 %v293_v46  ;;  %408 = vadd.xlane.f32.xlu0 %v292_v47  ;;  %v2234_v46 = vld [vmem:[%s1937_s6 + $0x1d8] sm:$0xff]  ;;  %v2237_v47 = vld [vmem:[%s1937_s6 + $0x1d0] sm:$0xff] }
  0xa9   : > { %2547 = vst [vmem:[#allocation20_spill] sm:$0xff] %v2234_v46  ;;  %2548 = vst [vmem:[#allocation21_spill] sm:$0xff] %v2237_v47  ;;  %v299_v55 = vmul.f32 %v2234_v46, %v2234_v46 }
  0xac   : > { %414 = vadd.xlane.f32.xlu1 %v295_v62  ;;  %412 = vadd.xlane.f32.xlu0 %v294_v63  ;;  %v298_v62 = vmul.f32 %v2237_v47, %v2237_v47  ;;  %v2244_v63 = vld [vmem:[%s1937_s6 + $0x1e8] sm:$0xff] }
  0xad   : > { %2549 = vst [vmem:[#allocation22_spill] sm:$0xff] %v2244_v63  ;;  %v301_v15 = vmul.f32 %v2244_v63, %v2244_v63 }
  0xb0   : > { %418 = vadd.xlane.f32.xlu1 %v297_v30  ;;  %416 = vadd.xlane.f32.xlu0 %v296_v31  ;;  %v2254_v30 = vld [vmem:[%s1937_s6 + $0x1f8] sm:$0xff]  ;;  %v2257_v31 = vld [vmem:[%s1937_s6 + $0x1f0] sm:$0xff] }
  0xb1   : > { %2551 = vst [vmem:[#allocation24_spill] sm:$0xff] %v2254_v30  ;;  %2552 = vst [vmem:[#allocation25_spill] sm:$0xff] %v2257_v31  ;;  %v303_v47 = vmul.f32 %v2254_v30, %v2254_v30  ;;  %v302_v46 = vmul.f32 %v2257_v31, %v2257_v31 }
  0xb4   : > { %422 = vadd.xlane.f32.xlu1 %v299_v55  ;;  %420 = vadd.xlane.f32.xlu0 %v298_v62 }
  0xb8   : > { %426 = vadd.xlane.f32.xlu1 %v301_v15  ;;  %424 = vadd.xlane.f32.xlu0 %v300_v14 }
  0xbc   : > { %430 = vadd.xlane.f32.xlu1 %v303_v47  ;;  %428 = vadd.xlane.f32.xlu0 %v302_v46 }
  0xcd   : > { %v309_v55 = vpop.xlane.xlu1 %308  ;;  %v305_v62 = vpop.xlane.xlu0 %304 }
  0xce   : > { %v434_v63 = vmax.f32 %v309_v55, 1e-24  ;;  %v432_v39 = vmax.f32 %v305_v62, 1e-24 }
  0xd0   : > { %1545 = vrsqrt.f32 %v434_v63 }
  0xd1   : > { %1547 = vrsqrt.f32 %v432_v39  ;;  %v311_v54 = vpop.xlane.xlu1 %310  ;;  %v307_v38 = vpop.xlane.xlu0 %306 }
  0xd2   : > { %v435_v23 = vmax.f32 %v311_v54, 1e-24  ;;  %v433_v22 = vmax.f32 %v307_v38, 1e-24 }
  0xd4   : > { %1549 = vrsqrt.f32 %v435_v23 }
  0xd5   : > { %1551 = vrsqrt.f32 %v433_v22  ;;  %v315_v14 = vpop.xlane.xlu1 %314  ;;  %v313_v15 = vpop.xlane.xlu0 %312 }
  0xd6   : > { %v437_v30 = vmax.f32 %v315_v14, 1e-24  ;;  %v436_v31 = vmax.f32 %v313_v15, 1e-24 }
  0xd8   : > { %1553 = vrsqrt.f32 %v437_v30 }
  0xd9   : > { %1555 = vrsqrt.f32 %v436_v31  ;;  %v319_v46 = vpop.xlane.xlu1 %318  ;;  %v317_v47 = vpop.xlane.xlu0 %316 }
  0xda   : > { %v1546_v55 = vpop.eup %1545  ;;  %v439_v62 = vmax.f32 %v319_v46, 1e-24  ;;  %v438_v63 = vmax.f32 %v317_v47, 1e-24 }
  0xdb   : > { %v1548_v39 = vpop.eup %1547  ;;  %v562_v7 = vmul.f32 %v1546_v55, %v1944_v0 }
  0xdc   : > { %v560_v38 = vmul.f32 %v1548_v39, %v1947_v1  ;;  %1557 = vrsqrt.f32 %v439_v62 }
  0xdd   : > { %626 = vst [vmem:[%s2267_s20 + $0x10] sm:$0xff] %v562_v7  ;;  %1559 = vrsqrt.f32 %v438_v63  ;;  %v323_v22 = vpop.xlane.xlu1 %322  ;;  %v321_v23 = vpop.xlane.xlu0 %320 }
  0xde   : > { %v1550_v54 = vpop.eup %1549  ;;  %624 = vst [vmem:[%s2267_s20] sm:$0xff] %v560_v38  ;;  %v441_v30 = vmax.f32 %v323_v22, 1e-24  ;;  %v440_v31 = vmax.f32 %v321_v23, 1e-24 }
  0xdf   : > { %v1552_v0 = vpop.eup %1551  ;;  %v563_v1 = vmul.f32 %v1550_v54, %v1950_v2 }
  0xe0   : > { %v561_v14 = vmul.f32 %v1552_v0, %v1957_v5  ;;  %1561 = vrsqrt.f32 %v441_v30 }
  0xe1   : > { %627 = vst [vmem:[%s2267_s20 + $0x18] sm:$0xff] %v563_v1  ;;  %v1305_v15 = vpack.c.bf16 %v563_v1, %v562_v7  ;;  %1563 = vrsqrt.f32 %v440_v31  ;;  %v327_v46 = vpop.xlane.xlu1 %326  ;;  %v325_v47 = vpop.xlane.xlu0 %324 }
  0xe2   : > { %v1554_v55 = vpop.eup %1553  ;;  %625 = vst [vmem:[%s2267_s20 + $0x8] sm:$0xff] %v561_v14  ;;  %v1300_v62 = vpack.c.bf16 %v561_v14, %v560_v38  ;;  %v443_v63 = vmax.f32 %v327_v46, 1e-24  ;;  %v442_v39 = vmax.f32 %v325_v47, 1e-24 }
  0xe3   : > { %v1556_v22 = vpop.eup %1555  ;;  %1457 = vst [vmem:[%s2276_s30 + $0x8] sm:$0xff] %v1305_v15   ;;  %v565_v2 = vmul.f32 %v1554_v55, %v1964_v8 }
  0xe4   : > { %1301 = vst [vmem:[%s2276_s30] sm:$0xff] %v1300_v62   ;;  %v564_v5 = vmul.f32 %v1556_v22, %v1967_v9  ;;  %1565 = vrsqrt.f32 %v443_v63 }
  0xe5   : > { %629 = vst [vmem:[%s2267_s20 + $0x28] sm:$0xff] %v565_v2  ;;  %1567 = vrsqrt.f32 %v442_v39  ;;  %v331_v7 = vpop.xlane.xlu1 %330  ;;  %v329_v38 = vpop.xlane.xlu0 %328 }
  0xe6   : > { %v1558_v23 = vpop.eup %1557  ;;  %628 = vst [vmem:[%s2267_s20 + $0x20] sm:$0xff] %v564_v5  ;;  %v1310_v54 = vpack.c.bf16 %v565_v2, %v564_v5  ;;  %v445_v30 = vmax.f32 %v331_v7, 1e-24  ;;  %v444_v31 = vmax.f32 %v329_v38, 1e-24 }
  0xe7   : > { %v1560_v0 = vpop.eup %1559  ;;  %v567_v1 = vmul.f32 %v1558_v23, %v1974_v12 }
  0xe8   : > { %1458 = vst [vmem:[%s2276_s30 + $0x10] sm:$0xff] %v1310_v54   ;;  %v566_v8 = vmul.f32 %v1560_v0, %v1977_v13  ;;  %1569 = vrsqrt.f32 %v445_v30 }
  0xe9   : > { %631 = vst [vmem:[%s2267_s20 + $0x38] sm:$0xff] %v567_v1  ;;  %1571 = vrsqrt.f32 %v444_v31  ;;  %v335_v9 = vpop.xlane.xlu1 %334  ;;  %v333_v14 = vpop.xlane.xlu0 %332 }
  0xea   : > { %v1562_v15 = vpop.eup %1561  ;;  %630 = vst [vmem:[%s2267_s20 + $0x30] sm:$0xff] %v566_v8  ;;  %v1315_v46 = vpack.c.bf16 %v567_v1, %v566_v8  ;;  %v447_v47 = vmax.f32 %v335_v9, 1e-24  ;;  %v446_v55 = vmax.f32 %v333_v14, 1e-24 }
  0xeb   : > { %v1564_v62 = vpop.eup %1563  ;;  %v569_v63 = vmul.f32 %v1562_v15, %v1984_v16 }
  0xec   : > { %1459 = vst [vmem:[%s2276_s30 + $0x18] sm:$0xff] %v1315_v46   ;;  %v568_v12 = vmul.f32 %v1564_v62, %v1987_v17  ;;  %1573 = vrsqrt.f32 %v447_v47 }
  0xed   : > { %633 = vst [vmem:[%s2267_s20 + $0x48] sm:$0xff] %v569_v63  ;;  %1575 = vrsqrt.f32 %v446_v55  ;;  %v339_v13 = vpop.xlane.xlu1 %338  ;;  %v337_v39 = vpop.xlane.xlu0 %336 }
  0xee   : > { %v1566_v22 = vpop.eup %1565  ;;  %632 = vst [vmem:[%s2267_s20 + $0x40] sm:$0xff] %v568_v12  ;;  %v1320_v2 = vpack.c.bf16 %v569_v63, %v568_v12  ;;  %v449_v5 = vmax.f32 %v339_v13, 1e-24  ;;  %v448_v7 = vmax.f32 %v337_v39, 1e-24 }
  0xef   : > { %v1568_v38 = vpop.eup %1567  ;;  %v571_v23 = vmul.f32 %v1566_v22, %v1994_v20 }
  0xf0   : > { %1460 = vst [vmem:[%s2276_s30 + $0x20] sm:$0xff] %v1320_v2   ;;  %v570_v16 = vmul.f32 %v1568_v38, %v1997_v21  ;;  %1577 = vrsqrt.f32 %v449_v5 }
  0xf1   : > { %635 = vst [vmem:[%s2267_s20 + $0x58] sm:$0xff] %v571_v23  ;;  %1579 = vrsqrt.f32 %v448_v7  ;;  %v343_v17 = vpop.xlane.xlu1 %342  ;;  %v341_v54 = vpop.xlane.xlu0 %340 }
  0xf2   : > { %v1570_v30 = vpop.eup %1569  ;;  %634 = vst [vmem:[%s2267_s20 + $0x50] sm:$0xff] %v570_v16  ;;  %v1325_v31 = vpack.c.bf16 %v571_v23, %v570_v16  ;;  %v451_v0 = vmax.f32 %v343_v17, 1e-24  ;;  %v450_v1 = vmax.f32 %v341_v54, 1e-24 }
  0xf3   : > { %v1572_v8 = vpop.eup %1571  ;;  %v573_v9 = vmul.f32 %v1570_v30, %v2004_v24 }
  0xf4   : > { %1461 = vst [vmem:[%s2276_s30 + $0x28] sm:$0xff] %v1325_v31   ;;  %v572_v20 = vmul.f32 %v1572_v8, %v2007_v25  ;;  %1581 = vrsqrt.f32 %v451_v0 }
  0xf5   : > { %637 = vst [vmem:[%s2267_s20 + $0x68] sm:$0xff] %v573_v9  ;;  %1583 = vrsqrt.f32 %v450_v1  ;;  %v347_v21 = vpop.xlane.xlu1 %346  ;;  %v345_v14 = vpop.xlane.xlu0 %344 }
  0xf6   : > { %v1574_v15 = vpop.eup %1573  ;;  %636 = vst [vmem:[%s2267_s20 + $0x60] sm:$0xff] %v572_v20  ;;  %v1330_v46 = vpack.c.bf16 %v573_v9, %v572_v20  ;;  %v453_v47 = vmax.f32 %v347_v21, 1e-24  ;;  %v452_v55 = vmax.f32 %v345_v14, 1e-24 }
  0xf7   : > { %v1576_v62 = vpop.eup %1575  ;;  %v575_v63 = vmul.f32 %v1574_v15, %v2014_v28 }
  0xf8   : > { %1462 = vst [vmem:[%s2276_s30 + $0x30] sm:$0xff] %v1330_v46   ;;  %v574_v24 = vmul.f32 %v1576_v62, %v2017_v29  ;;  %1585 = vrsqrt.f32 %v453_v47 }
  0xf9   : > { %639 = vst [vmem:[%s2267_s20 + $0x78] sm:$0xff] %v575_v63  ;;  %1587 = vrsqrt.f32 %v452_v55  ;;  %v351_v25 = vpop.xlane.xlu1 %350  ;;  %v349_v12 = vpop.xlane.xlu0 %348 }
  0xfa   : > { %v1578_v13 = vpop.eup %1577  ;;  %638 = vst [vmem:[%s2267_s20 + $0x70] sm:$0xff] %v574_v24  ;;  %v1335_v39 = vpack.c.bf16 %v575_v63, %v574_v24  ;;  %v455_v22 = vmax.f32 %v351_v25, 1e-24  ;;  %v454_v2 = vmax.f32 %v349_v12, 1e-24 }
  0xfb   : > { %v1580_v5 = vpop.eup %1579  ;;  %v577_v7 = vmul.f32 %v1578_v13, %v2024_v32 }
  0xfc   : > { %1463 = vst [vmem:[%s2276_s30 + $0x38] sm:$0xff] %v1335_v39   ;;  %v576_v28 = vmul.f32 %v1580_v5, %v2027_v33  ;;  %1589 = vrsqrt.f32 %v455_v22 }
  0xfd   : > { %641 = vst [vmem:[%s2267_s20 + $0x88] sm:$0xff] %v577_v7  ;;  %1591 = vrsqrt.f32 %v454_v2  ;;  %v355_v29 = vpop.xlane.xlu1 %354  ;;  %v353_v38 = vpop.xlane.xlu0 %352 }
  0xfe   : > { %v1582_v23 = vpop.eup %1581  ;;  %640 = vst [vmem:[%s2267_s20 + $0x80] sm:$0xff] %v576_v28  ;;  %v1340_v16 = vpack.c.bf16 %v577_v7, %v576_v28  ;;  %v457_v17 = vmax.f32 %v355_v29, 1e-24  ;;  %v456_v54 = vmax.f32 %v353_v38, 1e-24 }
  0xff   : > { %v1584_v30 = vpop.eup %1583  ;;  %v579_v31 = vmul.f32 %v1582_v23, %v2034_v36 }
 0x100   : > { %1464 = vst [vmem:[%s2276_s30 + $0x40] sm:$0xff] %v1340_v16   ;;  %v578_v32 = vmul.f32 %v1584_v30, %v2037_v37  ;;  %1593 = vrsqrt.f32 %v457_v17 }
 0x101   : > { %643 = vst [vmem:[%s2267_s20 + $0x98] sm:$0xff] %v579_v31  ;;  %1595 = vrsqrt.f32 %v456_v54  ;;  %v359_v33 = vpop.xlane.xlu1 %358  ;;  %v357_v0 = vpop.xlane.xlu0 %356 }
 0x102   : > { %v1586_v1 = vpop.eup %1585  ;;  %642 = vst [vmem:[%s2267_s20 + $0x90] sm:$0xff] %v578_v32  ;;  %v1345_v8 = vpack.c.bf16 %v579_v31, %v578_v32  ;;  %v459_v9 = vmax.f32 %v359_v33, 1e-24  ;;  %v458_v20 = vmax.f32 %v357_v0, 1e-24 }
 0x103   : > { %v1588_v21 = vpop.eup %1587  ;;  %v581_v14 = vmul.f32 %v1586_v1, %v2044_v40 }
 0x104   : > { %1465 = vst [vmem:[%s2276_s30 + $0x48] sm:$0xff] %v1345_v8   ;;  %v580_v36 = vmul.f32 %v1588_v21, %v2047_v41  ;;  %1597 = vrsqrt.f32 %v459_v9 }
 0x105   : > { %645 = vst [vmem:[%s2267_s20 + $0xa8] sm:$0xff] %v581_v14  ;;  %1599 = vrsqrt.f32 %v458_v20  ;;  %v363_v37 = vpop.xlane.xlu1 %362  ;;  %v361_v15 = vpop.xlane.xlu0 %360 }
 0x106   : > { %v1590_v46 = vpop.eup %1589  ;;  %644 = vst [vmem:[%s2267_s20 + $0xa0] sm:$0xff] %v580_v36  ;;  %v1350_v47 = vpack.c.bf16 %v581_v14, %v580_v36  ;;  %v461_v55 = vmax.f32 %v363_v37, 1e-24  ;;  %v460_v62 = vmax.f32 %v361_v15, 1e-24 }
 0x107   : > { %v1592_v63 = vpop.eup %1591  ;;  %v583_v24 = vmul.f32 %v1590_v46, %v2054_v44 }
 0x108   : > { %1466 = vst [vmem:[%s2276_s30 + $0x50] sm:$0xff] %v1350_v47   ;;  %v582_v40 = vmul.f32 %v1592_v63, %v2057_v45  ;;  %1601 = vrsqrt.f32 %v461_v55 }
 0x109   : > { %647 = vst [vmem:[%s2267_s20 + $0xb8] sm:$0xff] %v583_v24  ;;  %1603 = vrsqrt.f32 %v460_v62  ;;  %v367_v41 = vpop.xlane.xlu1 %366  ;;  %v365_v25 = vpop.xlane.xlu0 %364 }
 0x10a   : > { %v1594_v12 = vpop.eup %1593  ;;  %646 = vst [vmem:[%s2267_s20 + $0xb0] sm:$0xff] %v582_v40  ;;  %v1355_v13 = vpack.c.bf16 %v583_v24, %v582_v40  ;;  %v463_v39 = vmax.f32 %v367_v41, 1e-24  ;;  %v462_v22 = vmax.f32 %v365_v25, 1e-24 }
 0x10b   : > { %v1596_v2 = vpop.eup %1595  ;;  %v585_v5 = vmul.f32 %v1594_v12, %v2064_v48 }
 0x10c   : > { %1467 = vst [vmem:[%s2276_s30 + $0x58] sm:$0xff] %v1355_v13   ;;  %v584_v44 = vmul.f32 %v1596_v2, %v2067_v49  ;;  %1605 = vrsqrt.f32 %v463_v39 }
 0x10d   : > { %649 = vst [vmem:[%s2267_s20 + $0xc8] sm:$0xff] %v585_v5  ;;  %1607 = vrsqrt.f32 %v462_v22  ;;  %v371_v45 = vpop.xlane.xlu1 %370  ;;  %v369_v7 = vpop.xlane.xlu0 %368 }
 0x10e   : > { %v1598_v28 = vpop.eup %1597  ;;  %648 = vst [vmem:[%s2267_s20 + $0xc0] sm:$0xff] %v584_v44  ;;  %v1360_v29 = vpack.c.bf16 %v585_v5, %v584_v44  ;;  %v465_v38 = vmax.f32 %v371_v45, 1e-24  ;;  %v464_v23 = vmax.f32 %v369_v7, 1e-24 }
 0x10f   : > { %v1600_v16 = vpop.eup %1599  ;;  %v587_v17 = vmul.f32 %v1598_v28, %v2074_v52 }
 0x110   : > { %1468 = vst [vmem:[%s2276_s30 + $0x60] sm:$0xff] %v1360_v29   ;;  %v586_v48 = vmul.f32 %v1600_v16, %v2077_v53  ;;  %1609 = vrsqrt.f32 %v465_v38 }
 0x111   : > { %651 = vst [vmem:[%s2267_s20 + $0xd8] sm:$0xff] %v587_v17  ;;  %1611 = vrsqrt.f32 %v464_v23  ;;  %v375_v49 = vpop.xlane.xlu1 %374  ;;  %v373_v54 = vpop.xlane.xlu0 %372 }
 0x112   : > { %v1602_v30 = vpop.eup %1601  ;;  %650 = vst [vmem:[%s2267_s20 + $0xd0] sm:$0xff] %v586_v48  ;;  %v1365_v31 = vpack.c.bf16 %v587_v17, %v586_v48  ;;  %v467_v32 = vmax.f32 %v375_v49, 1e-24  ;;  %v466_v33 = vmax.f32 %v373_v54, 1e-24 }
 0x113   : > { %v1604_v0 = vpop.eup %1603  ;;  %v589_v1 = vmul.f32 %v1602_v30, %v2084_v56 }
 0x114   : > { %1469 = vst [vmem:[%s2276_s30 + $0x68] sm:$0xff] %v1365_v31   ;;  %v588_v52 = vmul.f32 %v1604_v0, %v2087_v57  ;;  %1613 = vrsqrt.f32 %v467_v32 }
 0x115   : > { %653 = vst [vmem:[%s2267_s20 + $0xe8] sm:$0xff] %v589_v1  ;;  %1615 = vrsqrt.f32 %v466_v33  ;;  %v379_v53 = vpop.xlane.xlu1 %378  ;;  %v377_v8 = vpop.xlane.xlu0 %376 }
 0x116   : > { %v1606_v9 = vpop.eup %1605  ;;  %652 = vst [vmem:[%s2267_s20 + $0xe0] sm:$0xff] %v588_v52  ;;  %v1370_v20 = vpack.c.bf16 %v589_v1, %v588_v52  ;;  %v469_v21 = vmax.f32 %v379_v53, 1e-24  ;;  %v468_v14 = vmax.f32 %v377_v8, 1e-24 }
 0x117   : > { %v1608_v36 = vpop.eup %1607  ;;  %v591_v37 = vmul.f32 %v1606_v9, %v2094_v60 }
 0x118   : > { %1470 = vst [vmem:[%s2276_s30 + $0x70] sm:$0xff] %v1370_v20   ;;  %v590_v56 = vmul.f32 %v1608_v36, %v2097_v61  ;;  %1617 = vrsqrt.f32 %v469_v21 }
 0x119   : > { %655 = vst [vmem:[%s2267_s20 + $0xf8] sm:$0xff] %v591_v37  ;;  %1619 = vrsqrt.f32 %v468_v14  ;;  %v383_v57 = vpop.xlane.xlu1 %382  ;;  %v381_v15 = vpop.xlane.xlu0 %380 }
 0x11a   : > { %v1610_v46 = vpop.eup %1609  ;;  %654 = vst [vmem:[%s2267_s20 + $0xf0] sm:$0xff] %v590_v56  ;;  %v1375_v47 = vpack.c.bf16 %v591_v37, %v590_v56  ;;  %v471_v55 = vmax.f32 %v383_v57, 1e-24  ;;  %v470_v62 = vmax.f32 %v381_v15, 1e-24 }
 0x11b   : > { %v1612_v63 = vpop.eup %1611  ;;  %v593_v24 = vmul.f32 %v1610_v46, %v2104_v3 }
 0x11c   : > { %1471 = vst [vmem:[%s2276_s30 + $0x78] sm:$0xff] %v1375_v47   ;;  %v592_v60 = vmul.f32 %v1612_v63, %v2107_v4  ;;  %1621 = vrsqrt.f32 %v471_v55 }
 0x11d   : > { %657 = vst [vmem:[%s2267_s20 + $0x108] sm:$0xff] %v593_v24  ;;  %1623 = vrsqrt.f32 %v470_v62  ;;  %v387_v61 = vpop.xlane.xlu1 %386  ;;  %v385_v40 = vpop.xlane.xlu0 %384 }
 0x11e   : > { %v1614_v41 = vpop.eup %1613  ;;  %656 = vst [vmem:[%s2267_s20 + $0x100] sm:$0xff] %v592_v60  ;;  %v1380_v25 = vpack.c.bf16 %v593_v24, %v592_v60  ;;  %v473_v12 = vmax.f32 %v387_v61, 1e-24  ;;  %v472_v13 = vmax.f32 %v385_v40, 1e-24 }
 0x11f   : > { %v1616_v39 = vpop.eup %1615  ;;  %v595_v22 = vmul.f32 %v1614_v41, %v2114_v10 }
 0x120   : > { %1472 = vst [vmem:[%s2276_s30 + $0x80] sm:$0xff] %v1380_v25   ;;  %v594_v3 = vmul.f32 %v1616_v39, %v2117_v11  ;;  %1625 = vrsqrt.f32 %v473_v12 }
 0x121   : > { %659 = vst [vmem:[%s2267_s20 + $0x118] sm:$0xff] %v595_v22  ;;  %1627 = vrsqrt.f32 %v472_v13  ;;  %v391_v4 = vpop.xlane.xlu1 %390  ;;  %v389_v2 = vpop.xlane.xlu0 %388 }
 0x122   : > { %v1618_v5 = vpop.eup %1617  ;;  %658 = vst [vmem:[%s2267_s20 + $0x110] sm:$0xff] %v594_v3  ;;  %v1385_v44 = vpack.c.bf16 %v595_v22, %v594_v3  ;;  %v475_v45 = vmax.f32 %v391_v4, 1e-24  ;;  %v474_v7 = vmax.f32 %v389_v2, 1e-24 }
 0x123   : > { %v1620_v28 = vpop.eup %1619  ;;  %v597_v29 = vmul.f32 %v1618_v5, %v2124_v18 }
 0x124   : > { %1473 = vst [vmem:[%s2276_s30 + $0x88] sm:$0xff] %v1385_v44   ;;  %v596_v10 = vmul.f32 %v1620_v28, %v2127_v19  ;;  %1629 = vrsqrt.f32 %v475_v45 }
 0x125   : > { %661 = vst [vmem:[%s2267_s20 + $0x128] sm:$0xff] %v597_v29  ;;  %1631 = vrsqrt.f32 %v474_v7  ;;  %v395_v11 = vpop.xlane.xlu1 %394  ;;  %v393_v38 = vpop.xlane.xlu0 %392 }
 0x126   : > { %v1622_v23 = vpop.eup %1621  ;;  %660 = vst [vmem:[%s2267_s20 + $0x120] sm:$0xff] %v596_v10  ;;  %v1390_v16 = vpack.c.bf16 %v597_v29, %v596_v10  ;;  %v477_v17 = vmax.f32 %v395_v11, 1e-24  ;;  %v476_v48 = vmax.f32 %v393_v38, 1e-24  ;;  %v2554_v10 = vld [vmem:[#allocation12_spill] sm:$0xff] }
 0x127   : > { %v1624_v49 = vpop.eup %1623  ;;  %v599_v54 = vmul.f32 %v1622_v23, %v2134_v26 }
 0x128   : > { %1474 = vst [vmem:[%s2276_s30 + $0x90] sm:$0xff] %v1390_v16   ;;  %v598_v18 = vmul.f32 %v1624_v49, %v2137_v27  ;;  %1633 = vrsqrt.f32 %v477_v17 }
 0x129   : > { %663 = vst [vmem:[%s2267_s20 + $0x138] sm:$0xff] %v599_v54  ;;  %1635 = vrsqrt.f32 %v476_v48  ;;  %v399_v19 = vpop.xlane.xlu1 %398  ;;  %v397_v30 = vpop.xlane.xlu0 %396 }
 0x12a   : > { %v1626_v31 = vpop.eup %1625  ;;  %662 = vst [vmem:[%s2267_s20 + $0x130] sm:$0xff] %v598_v18  ;;  %v1395_v32 = vpack.c.bf16 %v599_v54, %v598_v18  ;;  %v479_v33 = vmax.f32 %v399_v19, 1e-24  ;;  %v478_v0 = vmax.f32 %v397_v30, 1e-24  ;;  %v2556_v19 = vld [vmem:[#allocation14_spill] sm:$0xff] }
 0x12b   : > { %v1628_v1 = vpop.eup %1627  ;;  %v601_v52 = vmul.f32 %v1626_v31, %v2144_v34  ;;  %v2557_v31 = vld [vmem:[#allocation15_spill] sm:$0xff] }
 0x12c   : > { %1475 = vst [vmem:[%s2276_s30 + $0x98] sm:$0xff] %v1395_v32   ;;  %v600_v26 = vmul.f32 %v1628_v1, %v2147_v35  ;;  %1637 = vrsqrt.f32 %v479_v33 }
 0x12d   : > { %665 = vst [vmem:[%s2267_s20 + $0x148] sm:$0xff] %v601_v52  ;;  %1639 = vrsqrt.f32 %v478_v0  ;;  %v403_v27 = vpop.xlane.xlu1 %402  ;;  %v401_v53 = vpop.xlane.xlu0 %400 }
 0x12e   : > { %v1630_v8 = vpop.eup %1629  ;;  %664 = vst [vmem:[%s2267_s20 + $0x140] sm:$0xff] %v600_v26  ;;  %v1400_v9 = vpack.c.bf16 %v601_v52, %v600_v26  ;;  %v481_v20 = vmax.f32 %v403_v27, 1e-24  ;;  %v480_v21 = vmax.f32 %v401_v53, 1e-24 }
 0x12f   : > { %v1632_v14 = vpop.eup %1631  ;;  %v603_v36 = vmul.f32 %v1630_v8, %v2154_v42  ;;  %v2558_v8 = vld [vmem:[#allocation16_spill] sm:$0xff] }
 0x130   : > { %1476 = vst [vmem:[%s2276_s30 + $0xa0] sm:$0xff] %v1400_v9   ;;  %v602_v34 = vmul.f32 %v1632_v14, %v2157_v43  ;;  %1641 = vrsqrt.f32 %v481_v20  ;;  %v2559_v20 = vld [vmem:[#allocation17_spill] sm:$0xff] }
 0x131   : > { %667 = vst [vmem:[%s2267_s20 + $0x158] sm:$0xff] %v603_v36  ;;  %1643 = vrsqrt.f32 %v480_v21  ;;  %v407_v35 = vpop.xlane.xlu1 %406  ;;  %v405_v37 = vpop.xlane.xlu0 %404 }
 0x132   : > { %v1634_v56 = vpop.eup %1633  ;;  %666 = vst [vmem:[%s2267_s20 + $0x150] sm:$0xff] %v602_v34  ;;  %v1405_v57 = vpack.c.bf16 %v603_v36, %v602_v34  ;;  %v483_v15 = vmax.f32 %v407_v35, 1e-24  ;;  %v482_v46 = vmax.f32 %v405_v37, 1e-24 }
 0x133   : > { %v1636_v47 = vpop.eup %1635  ;;  %v605_v55 = vmul.f32 %v1634_v56, %v2164_v50 }
 0x134   : > { %1477 = vst [vmem:[%s2276_s30 + $0xa8] sm:$0xff] %v1405_v57   ;;  %v604_v42 = vmul.f32 %v1636_v47, %v2167_v51  ;;  %1645 = vrsqrt.f32 %v483_v15  ;;  %v2560_v15 = vld [vmem:[#allocation18_spill] sm:$0xff]  ;;  %v2561_v47 = vld [vmem:[#allocation19_spill] sm:$0xff] }
 0x135   : > { %669 = vst [vmem:[%s2267_s20 + $0x168] sm:$0xff] %v605_v55  ;;  %1647 = vrsqrt.f32 %v482_v46  ;;  %v411_v43 = vpop.xlane.xlu1 %410  ;;  %v409_v62 = vpop.xlane.xlu0 %408 }
 0x136   : > { %v1638_v63 = vpop.eup %1637  ;;  %668 = vst [vmem:[%s2267_s20 + $0x160] sm:$0xff] %v604_v42  ;;  %v1410_v24 = vpack.c.bf16 %v605_v55, %v604_v42  ;;  %v485_v60 = vmax.f32 %v411_v43, 1e-24  ;;  %v484_v61 = vmax.f32 %v409_v62, 1e-24 }
 0x137   : > { %v1640_v40 = vpop.eup %1639  ;;  %v607_v41 = vmul.f32 %v1638_v63, %v2174_v58  ;;  %v2553_v58 = vld [vmem:[#allocation11_spill] sm:$0xff]  ;;  %v2562_v63 = vld [vmem:[#allocation20_spill] sm:$0xff] }
 0x138   : > { %1478 = vst [vmem:[%s2276_s30 + $0xb0] sm:$0xff] %v1410_v24   ;;  %v606_v50 = vmul.f32 %v1640_v40, %v2177_v59  ;;  %1649 = vrsqrt.f32 %v485_v60  ;;  %v2563_v60 = vld [vmem:[#allocation21_spill] sm:$0xff] }
 0x139   : > { %671 = vst [vmem:[%s2267_s20 + $0x178] sm:$0xff] %v607_v41  ;;  %1651 = vrsqrt.f32 %v484_v61  ;;  %v415_v51 = vpop.xlane.xlu1 %414  ;;  %v413_v25 = vpop.xlane.xlu0 %412 }
 0x13a   : > { %v1642_v12 = vpop.eup %1641  ;;  %670 = vst [vmem:[%s2267_s20 + $0x170] sm:$0xff] %v606_v50  ;;  %v1415_v13 = vpack.c.bf16 %v607_v41, %v606_v50  ;;  %v487_v39 = vmax.f32 %v415_v51, 1e-24  ;;  %v486_v22 = vmax.f32 %v413_v25, 1e-24  ;;  %v2564_v51 = vld [vmem:[#allocation22_spill] sm:$0xff] }
 0x13b   : > { %v1644_v3 = vpop.eup %1643  ;;  %v609_v4 = vmul.f32 %v1642_v12, %v2184_v6  ;;  %v2555_v6 = vld [vmem:[#allocation13_spill] sm:$0xff]  ;;  %v2565_v12 = vld [vmem:[#allocation23_spill] sm:$0xff] }
 0x13c   : > { %1479 = vst [vmem:[%s2276_s30 + $0xb8] sm:$0xff] %v1415_v13   ;;  %v608_v2 = vmul.f32 %v1644_v3, %v2553_v58  ;;  %1653 = vrsqrt.f32 %v487_v39 }
 0x13d   : > { %673 = vst [vmem:[%s2267_s20 + $0x188] sm:$0xff] %v609_v4  ;;  %1655 = vrsqrt.f32 %v486_v22  ;;  %v419_v59 = vpop.xlane.xlu1 %418  ;;  %v417_v5 = vpop.xlane.xlu0 %416 }
 0x13e   : > { %v1646_v44 = vpop.eup %1645  ;;  %672 = vst [vmem:[%s2267_s20 + $0x180] sm:$0xff] %v608_v2  ;;  %v1420_v45 = vpack.c.bf16 %v609_v4, %v608_v2  ;;  %v489_v7 = vmax.f32 %v419_v59, 1e-24  ;;  %v488_v28 = vmax.f32 %v417_v5, 1e-24  ;;  %v2566_v4 = vld [vmem:[#allocation24_spill] sm:$0xff] }
 0x13f   : > { %v1648_v29 = vpop.eup %1647  ;;  %v611_v11 = vmul.f32 %v1646_v44, %v2554_v10  ;;  %v2567_v2 = vld [vmem:[#allocation25_spill] sm:$0xff] }
 0x140   : > { %1480 = vst [vmem:[%s2276_s30 + $0xc0] sm:$0xff] %v1420_v45   ;;  %v610_v38 = vmul.f32 %v1648_v29, %v2555_v6  ;;  %1657 = vrsqrt.f32 %v489_v7 }
 0x141   : > { %675 = vst [vmem:[%s2267_s20 + $0x198] sm:$0xff] %v611_v11  ;;  %1659 = vrsqrt.f32 %v488_v28  ;;  %v423_v23 = vpop.xlane.xlu1 %422  ;;  %v421_v16 = vpop.xlane.xlu0 %420 }
 0x142   : > { %v1650_v17 = vpop.eup %1649  ;;  %674 = vst [vmem:[%s2267_s20 + $0x190] sm:$0xff] %v610_v38  ;;  %v1425_v48 = vpack.c.bf16 %v611_v11, %v610_v38  ;;  %v491_v49 = vmax.f32 %v423_v23, 1e-24  ;;  %v490_v54 = vmax.f32 %v421_v16, 1e-24 }
 0x143   : > { %v1652_v18 = vpop.eup %1651  ;;  %v613_v30 = vmul.f32 %v1650_v17, %v2556_v19 }
 0x144   : > { %1481 = vst [vmem:[%s2276_s30 + $0xc8] sm:$0xff] %v1425_v48   ;;  %v612_v32 = vmul.f32 %v1652_v18, %v2557_v31  ;;  %1661 = vrsqrt.f32 %v491_v49 }
 0x145   : > { %677 = vst [vmem:[%s2267_s20 + $0x1a8] sm:$0xff] %v613_v30  ;;  %1663 = vrsqrt.f32 %v490_v54  ;;  %v427_v33 = vpop.xlane.xlu1 %426  ;;  %v425_v0 = vpop.xlane.xlu0 %424 }
 0x146   : > { %v1654_v1 = vpop.eup %1653  ;;  %676 = vst [vmem:[%s2267_s20 + $0x1a0] sm:$0xff] %v612_v32  ;;  %v1430_v52 = vpack.c.bf16 %v613_v30, %v612_v32  ;;  %v493_v26 = vmax.f32 %v427_v33, 1e-24  ;;  %v492_v27 = vmax.f32 %v425_v0, 1e-24 }
 0x147   : > { %v1656_v53 = vpop.eup %1655  ;;  %v615_v9 = vmul.f32 %v1654_v1, %v2558_v8 }
 0x148   : > { %1482 = vst [vmem:[%s2276_s30 + $0xd0] sm:$0xff] %v1430_v52   ;;  %v614_v21 = vmul.f32 %v1656_v53, %v2559_v20  ;;  %1665 = vrsqrt.f32 %v493_v26 }
 0x149   : > { %679 = vst [vmem:[%s2267_s20 + $0x1b8] sm:$0xff] %v615_v9  ;;  %1667 = vrsqrt.f32 %v492_v27  ;;  %v431_v14 = vpop.xlane.xlu1 %430  ;;  %v429_v36 = vpop.xlane.xlu0 %428 }
 0x14a   : > { %v1658_v34 = vpop.eup %1657  ;;  %678 = vst [vmem:[%s2267_s20 + $0x1b0] sm:$0xff] %v614_v21  ;;  %v1435_v35 = vpack.c.bf16 %v615_v9, %v614_v21  ;;  %v495_v37 = vmax.f32 %v431_v14, 1e-24  ;;  %v494_v56 = vmax.f32 %v429_v36, 1e-24 }
 0x14b   : > { %v1660_v57 = vpop.eup %1659  ;;  %v617_v46 = vmul.f32 %v1658_v34, %v2560_v15 }
 0x14c   : > { %1483 = vst [vmem:[%s2276_s30 + $0xd8] sm:$0xff] %v1435_v35   ;;  %v616_v55 = vmul.f32 %v1660_v57, %v2561_v47  ;;  %1669 = vrsqrt.f32 %v495_v37 }
 0x14d   : > { %681 = vst [vmem:[%s2267_s20 + $0x1c8] sm:$0xff] %v617_v46  ;;  %1671 = vrsqrt.f32 %v494_v56 }
 0x14e   : > { %v1662_v42 = vpop.eup %1661  ;;  %680 = vst [vmem:[%s2267_s20 + $0x1c0] sm:$0xff] %v616_v55  ;;  %v1440_v43 = vpack.c.bf16 %v617_v46, %v616_v55 }
 0x14f   : > { %v1664_v62 = vpop.eup %1663  ;;  %v619_v24 = vmul.f32 %v1662_v42, %v2562_v63 }
 0x150   : > { %1484 = vst [vmem:[%s2276_s30 + $0xe0] sm:$0xff] %v1440_v43   ;;  %v618_v61 = vmul.f32 %v1664_v62, %v2563_v60 }
 0x151   : > { %683 = vst [vmem:[%s2267_s20 + $0x1d8] sm:$0xff] %v619_v24 }
 0x152   : > { %v1666_v40 = vpop.eup %1665  ;;  %682 = vst [vmem:[%s2267_s20 + $0x1d0] sm:$0xff] %v618_v61  ;;  %v1445_v41 = vpack.c.bf16 %v619_v24, %v618_v61 }
 0x153   : > { %v1668_v50 = vpop.eup %1667  ;;  %v621_v25 = vmul.f32 %v1666_v40, %v2564_v51 }
 0x154   : > { %1485 = vst [vmem:[%s2276_s30 + $0xe8] sm:$0xff] %v1445_v41   ;;  %v620_v13 = vmul.f32 %v1668_v50, %v2565_v12 }
 0x155   : > { %685 = vst [vmem:[%s2267_s20 + $0x1e8] sm:$0xff] %v621_v25 }
 0x156   : > { %v1670_v39 = vpop.eup %1669  ;;  %684 = vst [vmem:[%s2267_s20 + $0x1e0] sm:$0xff] %v620_v13  ;;  %v1450_v22 = vpack.c.bf16 %v621_v25, %v620_v13 }
 0x157   : > { %v1672_v3 = vpop.eup %1671  ;;  %v623_v58 = vmul.f32 %v1670_v39, %v2566_v4 }
 0x158   : > { %1486 = vst [vmem:[%s2276_s30 + $0xf0] sm:$0xff] %v1450_v22   ;;  %v622_v59 = vmul.f32 %v1672_v3, %v2567_v2 }
 0x159   : > { %687 = vst [vmem:[%s2267_s20 + $0x1f8] sm:$0xff] %v623_v58 }
 0x15a   : > { %686 = vst [vmem:[%s2267_s20 + $0x1f0] sm:$0xff] %v622_v59  ;;  %v1455_v5 = vpack.c.bf16 %v623_v58, %v622_v59 }
 0x15b   : > { %1716 = shalt.err (!%p1713_p2)
}
 0x15c   : > { %s1717_s6 = scalar_lea.hbm %s2428_s14, 8192  ;;  %s1721_s3 = scalar_lea.hbm %s2515_s1, 16384 }
 0x15d   : > { %p1718_p4 = scmp.ne.s32.totalorder %s2428_s14, %s1717_s6  ;;  %p1722_p9 = scmp.lt.u32.totalorder %s2428_s14, %s2515_s1 }
 0x15e   : > { %p1723_p1 = scmp.lt.u32.totalorder %s1721_s3, %s1717_s6  ;;  %p1725_p6 = scmp.lt.u32.totalorder %s1717_s6, %s2428_s14 }
 0x15f   : > { %p1719_p5 = pnand %p1718_p4, %p2568_p11 }
 0x160   : > { %p1724_p3 = por %p1723_p1, %p1722_p9 }
 0x161   : > { %p1720_p7 = pneg %p1719_p5 }
 0x162   : > { %p1726_p12 = por %p1725_p6, %p1724_p3 }
 0x164   : > { %p1727_p13 = pnand %p1726_p12, %p1720_p7 }
 0x166   : > { %1730 = shalt.err (!%p1727_p13)
}
 0x167   : > { %s1807_s16 = smov 128   ;;  %s1808_s19 = smov 8   ;;  %1487 = vst [vmem:[%s2276_s30 + $0xf8] sm:$0xff] %v1455_v5  }
 0x168   : > { %1490 = dma.vmem_to_hbm [thread:$0]  (%p2568_p11), %s2434_s4, 8192, %s2428_s14, %s1009_s13, %s1807_s16, %s1807_s16, %s1808_s19  }
 0x169   : > { %s1014_s23 = scalar_lea.sflag [#allocation7], %s1931_s27  ;;  %s1731_s25 = scalar_lea.vmem %s2444_s17, 4096 }
 0x16a   : > { %p1732_p8 = scmp.ne.s32.totalorder %s2444_s17, %s1731_s25  ;;  %s1809_s26 = smov [#allocation6]  }
 0x16b   : > { %s1735_s29 = sshll.u32 %s1809_s26, 4  ;;  %s1736_s29 = int_to_ptr.vmem [resolvable:$false] %s1735_s29 }
 0x16c   : > { %p1733_p10 = pnand %p1732_p8, %p2568_p11  ;;  %s1737_s5 = scalar_lea.vmem %s1736_s29, 8192 }
 0x16d   : > { %p1738_p2 = scmp.lt.s32.totalorder %s2444_s17, %s1736_s29  ;;  %p1739_p4 = scmp.lt.s32.totalorder %s1737_s5, %s1731_s25 }
 0x16e   : > { %p1734_p0 = pneg %p1733_p10 }
 0x16f   : > { %p1740_p5 = por %p1739_p4, %p1738_p2 }
 0x171   : > { %p1741_p7 = pnand %p1740_p5, %p1734_p0 }
 0x173   : > { %1744 = shalt.err (!%p1741_p7)
}
 0x174   : > { %s1745_s30 = scalar_lea.hbm %s2442_s24, 4096  ;;  %s1749_s13 = scalar_lea.hbm %s2516_s2, 8192 }
 0x175   : > { %p1746_p9 = scmp.ne.s32.totalorder %s2442_s24, %s1745_s30  ;;  %p1750_p6 = scmp.lt.u32.totalorder %s2442_s24, %s2516_s2 }
 0x176   : > { %p1751_p12 = scmp.lt.u32.totalorder %s1749_s13, %s1745_s30  ;;  %p1753_p8 = scmp.lt.u32.totalorder %s1745_s30, %s2442_s24 }
 0x177   : > { %p1747_p1 = pnand %p1746_p9, %p2568_p11 }
 0x178   : > { %p1752_p13 = por %p1751_p12, %p1750_p6 }
 0x179   : > { %p1748_p3 = pneg %p1747_p1 }
 0x17a   : > { %p1754_p10 = por %p1753_p8, %p1752_p13 }
 0x17c   : > { %p1755_p0 = pnand %p1754_p10, %p1748_p3 }
 0x17e   : > { %1758 = shalt.err (!%p1755_p0)
}
 0x17f   : > { %s1810_s28 = smov 64   ;;  %s1811_s3 = smov 4  }
 0x180   : > { %1491 = dma.vmem_to_hbm [thread:$0]  (%p2568_p11), %s2444_s17, 4096, %s2442_s24, %s1014_s23, %s1810_s28, %s1810_s28, %s1811_s3  }
 0x181 PF: > { %s1058_s7 = sand.u32 1, %s1789_s9   ;;  %p2569_p2 = scmp.ne.s32.totalorder %s2536_s22, 0 }
 0x182   : > { %p2570_p4 = scmp.ge.s32.totalorder %s1801_s12, 2  ;;  %s1059_s8 = scalar_lea.sflag [#allocation4], %s1058_s7 }
 0x184   : > { %p1499_p5 = pnand %p2570_p4, %p2569_p2 }
 0x186   : > { %1780 = dma.done.wait (!%p1499_p5), %s1059_s8, 8192  }
 0x187   : > { %1782 = vsyncadd (!%p1499_p5), %s1059_s8, 4294959104  ;;  %s1068_s16 = scalar_lea.sflag [#allocation7], %s1058_s7 }
 0x188   : > { %1784 = dma.done.wait (!%p1499_p5), %s1068_s16, 4096  }
 0x189   : > { %1786 = vsyncadd (!%p1499_p5), %s1068_s16, 4294963200  ;;  %p19_p11 = scmp.ge.s32.totalorder %s1852_s15, 4   ;;  %s2571_s9 = smov %s1793_s10 }
 0x18a   : > { %s2572_s10 = smov %s1797_s11  ;;  %s2573_s11 = smov %s1864_s18 }
 0x18b   : > { %s2574_s12 = smov %s1852_s15  ;;  %21 = sbr.rel (!%p19_p11) target bundleno = 7 (0x7), region = 86 }
 0x192   :  { %1073 = vsyncpa [#allocation3], 1 }
 0x193   :  { %1075 = vsyncpa [#allocation3 + $0x1], 1 }
 0x194   :  { %1076 = vsyncpa [#allocation4], 1 }
 0x195   :  { %1078 = vsyncpa [#allocation4 + $0x1], 1 }
 0x196   :  { %1079 = vsyncpa [#allocation7], 1 }
 0x197   :  { %1081 = vsyncpa [#allocation7 + $0x1], 1 }

</bundles_post_ra>
